<compile_context>
chip_gen: v7x
topology: tpu7x:2x2x1
jax: 0.10.0
libtpu: 0.0.40
codegen_flags: <defaults>
</compile_context>

<pallas_src>
import functools

import jax
import jax.numpy as jnp
from jax.experimental import pallas as pl
from jax.experimental.pallas import tpu as pltpu


# ------------------------------ helpers ------------------------------------

def _round_up(n: int, m: int) -> int:
    return ((n + m - 1) // m) * m


# ----------------------------- Pallas kernel -------------------------------

def _fused_mlp_kernel(x_ref, w_ref, b_ref, o_ref, *, identity_flags):
    """Fused ResidualMLP forward on one batch tile.

    x_ref : (TB, D)      activations tile (feature dim padded, lane-dense)
    w_ref : (L, D, D)    per-layer effective weights (shortcut already folded
                         for projection layers; zero-padded)
    b_ref : (L, 1, D)    per-layer biases (zero-padded)
    o_ref : (TB, D)      output tile
    identity_flags : static tuple[bool] -- True where the block uses the
                         identity shortcut (in_features == out_features).
    """
    h = x_ref[...].astype(jnp.float32)
    n_layers = len(identity_flags)
    for l in range(n_layers):                       # static unroll (L is tiny)
        out = jnp.dot(h, w_ref[l], preferred_element_type=jnp.float32)
        out = out + b_ref[l]                        # (1, D) broadcasts
        if identity_flags[l]:
            out = out + h                           # identity shortcut
        if l < n_layers - 1:
            out = jnp.tanh(out)                     # all but final block
        h = out
    o_ref[...] = h.astype(o_ref.dtype)


# --------------------------- parameter setup (glue) -------------------------

def init_residual_mlp_params(key, input_dim, output_dim, hidden_dim=128,
                             num_layers=4, dtype=jnp.float32):
    """Deterministic synthetic init mirroring the PyTorch module's shapes.

    Returns raw per-layer params (PyTorch layout) for reference checking.
    """
    dims = [input_dim] + [hidden_dim] * (num_layers - 1) + [output_dim]
    layers = []
    for i in range(len(dims) - 1):
        in_f, out_f = dims[i], dims[i + 1]
        key, k_w, k_b, k_s = jax.random.split(key, 4)
        scale = float(in_f) ** -0.5
        # nn.Linear(in_f, out_f): weight (out_f, in_f), bias (out_f,)
        w = jax.random.uniform(k_w, (out_f, in_f), dtype, -scale, scale)
        b = jax.random.uniform(k_b, (out_f,), dtype, -scale, scale)
        if in_f != out_f:
            # shortcut = nn.Linear(in_f, out_f, bias=False)
            ws = jax.random.uniform(k_s, (out_f, in_f), dtype, -scale, scale)
        else:
            ws = None
        layers.append({
            "w": w, "b": b, "ws": ws,
            "in_f": in_f, "out_f": out_f,
            "apply_tanh": (i != len(dims) - 2),
        })
    return layers


def pack_params(layers, dtype=jnp.float32):
    """Stack per-layer params into lane-dense padded arrays for the kernel."""
    n_layers = len(layers)
    d_pad = _round_up(max(max(p["in_f"], p["out_f"]) for p in layers), 128)

    w_stack = jnp.zeros((n_layers, d_pad, d_pad), dtype)
    b_stack = jnp.zeros((n_layers, 1, d_pad), dtype)
    identity_flags = []
    for l, p in enumerate(layers):
        in_f, out_f = p["in_f"], p["out_f"]
        w_eff = p["w"].T                             # (in_f, out_f)
        if p["ws"] is not None:
            # Fold projection shortcut:  x@W^T + x@Ws^T == x@(W^T + Ws^T)
            w_eff = w_eff + p["ws"].T
            identity_flags.append(False)
        else:
            identity_flags.append(True)
        w_stack = w_stack.at[l, :in_f, :out_f].set(w_eff)
        b_stack = b_stack.at[l, 0, :out_f].set(p["b"])

    packed = {
        "w_stack": w_stack,
        "b_stack": b_stack,
        "identity_flags": tuple(identity_flags),
        "in_dim": layers[0]["in_f"],
        "out_dim": layers[-1]["out_f"],
        "d_pad": d_pad,
    }
    return packed


# ------------------------------ forward pass --------------------------------

def residual_mlp_forward(packed, x, *, max_batch_tile=512):
    """Fused ResidualMLP forward.  x: (B, input_dim) float32."""
    w_stack = packed["w_stack"]
    b_stack = packed["b_stack"]
    identity_flags = packed["identity_flags"]
    in_dim = packed["in_dim"]
    out_dim = packed["out_dim"]
    d_pad = packed["d_pad"]
    n_layers = w_stack.shape[0]

    B = x.shape[0]
    # Batch tile: multiple of 8 (sublane), capped so VMEM stays comfortable.
    tb = min(_round_up(B, 8), max_batch_tile)
    b_pad = _round_up(B, tb)

    # Pad input to (b_pad, d_pad): zero rows/cols keep the math exact and
    # present a lane-dense slab to the kernel.
    x_pad = jnp.zeros((b_pad, d_pad), x.dtype).at[:B, :in_dim].set(x)

    kernel = functools.partial(_fused_mlp_kernel, identity_flags=identity_flags)

    out_pad = pl.pallas_call(
        kernel,
        out_shape=jax.ShapeDtypeStruct((b_pad, d_pad), x.dtype),
        grid=(b_pad // tb,),
        in_specs=[
            # activations: one batch tile per grid step
            pl.BlockSpec((tb, d_pad), lambda i: (i, 0)),
            # weights / biases: same block every step -> stay resident in VMEM
            pl.BlockSpec((n_layers, d_pad, d_pad), lambda i: (0, 0, 0)),
            pl.BlockSpec((n_layers, 1, d_pad), lambda i: (0, 0, 0)),
        ],
        out_specs=pl.BlockSpec((tb, d_pad), lambda i: (i, 0)),
        compiler_params=pltpu.CompilerParams(
            dimension_semantics=("parallel",)),
    )(x_pad, w_stack, b_stack)

    return out_pad[:B, :out_dim]


# --------------------------------- main --------------------------------------

if __name__ == "__main__":
    INPUT_DIM, OUTPUT_DIM, HIDDEN_DIM, NUM_LAYERS = 16, 8, 32, 4
    BATCH = 8

    key = jax.random.PRNGKey(0)
    key, k_x = jax.random.split(key)
    x = jax.random.normal(k_x, (BATCH, INPUT_DIM), jnp.float32)

    layers = init_residual_mlp_params(
        key, INPUT_DIM, OUTPUT_DIM, hidden_dim=HIDDEN_DIM, num_layers=NUM_LAYERS)
    packed = pack_params(layers)

    out = residual_mlp_forward(packed, x)
    out = jax.block_until_ready(out)

    # Pure-JAX reference of the ORIGINAL (un-fused, un-folded) math.
    ref = x
    for p in layers:
        y = ref @ p["w"].T + p["b"]
        y = y + (ref if p["ws"] is None else ref @ p["ws"].T)
        ref = jnp.tanh(y) if p["apply_tanh"] else y

    assert out.shape == (BATCH, OUTPUT_DIM)
    assert jnp.allclose(out, ref, atol=1e-5), "mismatch vs reference"

    print("KERNEL_OK")
</pallas_src>

<mosaic_0001>
module attributes {stable_mosaic.version = 11 : i64} {
  func.func @_fused_mlp_kernel(%arg0: i32, %arg1: memref<8x128xf32, #tpu.memory_space<vmem>>, %arg2: memref<4x128x128xf32, #tpu.memory_space<vmem>>, %arg3: memref<4x1x128xf32, #tpu.memory_space<vmem>>, %arg4: memref<8x128xf32, #tpu.memory_space<vmem>>) attributes {dimension_semantics = [#tpu.dimension_semantics<parallel>], iteration_bounds = array<i64: 1>, scalar_prefetch = 0 : i64, scratch_operands = 0 : i64, tpu.core_type = #tpu.core_type<tc>, window_params = [{transform_indices = @transform_0, window_bounds = array<i64: 8, 128>}, {pipeline_mode = #tpu.pipeline_mode<synchronous>, transform_indices = @transform_1, window_bounds = array<i64: 4, 128, 128>}, {pipeline_mode = #tpu.pipeline_mode<synchronous>, transform_indices = @transform_2, window_bounds = array<i64: 4, 1, 128>}, {transform_indices = @transform_3, window_bounds = array<i64: 8, 128>}]} {
    %c0 = arith.constant 0 : index
    %c0_0 = arith.constant 0 : index
    %0 = vector.load %arg1[%c0, %c0_0] : memref<8x128xf32, #tpu.memory_space<vmem>>, vector<8x128xf32>
    %c0_1 = arith.constant 0 : index
    %c0_2 = arith.constant 0 : index
    %c0_3 = arith.constant 0 : index
    %1 = vector.load %arg2[%c0_1, %c0_2, %c0_3] : memref<4x128x128xf32, #tpu.memory_space<vmem>>, vector<1x128x128xf32>
    %2 = vector.shape_cast %1 : vector<1x128x128xf32> to vector<128x128xf32>
    %cst = arith.constant dense<0.000000e+00> : vector<8x128xf32>
    %3 = tpu.matmul %0, %2, %cst {dimension_numbers = #tpu.dot_dimension_numbers<[1], [0], [0], [1], [0, 0, 1, 1], [], []>} : vector<8x128xf32>, vector<128x128xf32>, vector<8x128xf32> -> vector<8x128xf32>
    %c0_4 = arith.constant 0 : index
    %c0_5 = arith.constant 0 : index
    %c0_6 = arith.constant 0 : index
    %4 = vector.load %arg3[%c0_4, %c0_5, %c0_6] : memref<4x1x128xf32, #tpu.memory_space<vmem>>, vector<1x1x128xf32>
    %5 = vector.shape_cast %4 : vector<1x1x128xf32> to vector<1x128xf32>
    %6 = vector.broadcast %5 : vector<1x128xf32> to vector<8x128xf32>
    %7 = arith.addf %3, %6 : vector<8x128xf32>
    %8 = math.tanh %7 : vector<8x128xf32>
    %c1 = arith.constant 1 : index
    %c0_7 = arith.constant 0 : index
    %c0_8 = arith.constant 0 : index
    %9 = vector.load %arg2[%c1, %c0_7, %c0_8] : memref<4x128x128xf32, #tpu.memory_space<vmem>>, vector<1x128x128xf32>
    %10 = vector.shape_cast %9 : vector<1x128x128xf32> to vector<128x128xf32>
    %cst_9 = arith.constant dense<0.000000e+00> : vector<8x128xf32>
    %11 = tpu.matmul %8, %10, %cst_9 {dimension_numbers = #tpu.dot_dimension_numbers<[1], [0], [0], [1], [0, 0, 1, 1], [], []>} : vector<8x128xf32>, vector<128x128xf32>, vector<8x128xf32> -> vector<8x128xf32>
    %c1_10 = arith.constant 1 : index
    %c0_11 = arith.constant 0 : index
    %c0_12 = arith.constant 0 : index
    %12 = vector.load %arg3[%c1_10, %c0_11, %c0_12] : memref<4x1x128xf32, #tpu.memory_space<vmem>>, vector<1x1x128xf32>
    %13 = vector.shape_cast %12 : vector<1x1x128xf32> to vector<1x128xf32>
    %14 = vector.broadcast %13 : vector<1x128xf32> to vector<8x128xf32>
    %15 = arith.addf %11, %14 : vector<8x128xf32>
    %16 = arith.addf %15, %8 : vector<8x128xf32>
    %17 = math.tanh %16 : vector<8x128xf32>
    %c2 = arith.constant 2 : index
    %c0_13 = arith.constant 0 : index
    %c0_14 = arith.constant 0 : index
    %18 = vector.load %arg2[%c2, %c0_13, %c0_14] : memref<4x128x128xf32, #tpu.memory_space<vmem>>, vector<1x128x128xf32>
    %19 = vector.shape_cast %18 : vector<1x128x128xf32> to vector<128x128xf32>
    %cst_15 = arith.constant dense<0.000000e+00> : vector<8x128xf32>
    %20 = tpu.matmul %17, %19, %cst_15 {dimension_numbers = #tpu.dot_dimension_numbers<[1], [0], [0], [1], [0, 0, 1, 1], [], []>} : vector<8x128xf32>, vector<128x128xf32>, vector<8x128xf32> -> vector<8x128xf32>
    %c2_16 = arith.constant 2 : index
    %c0_17 = arith.constant 0 : index
    %c0_18 = arith.constant 0 : index
    %21 = vector.load %arg3[%c2_16, %c0_17, %c0_18] : memref<4x1x128xf32, #tpu.memory_space<vmem>>, vector<1x1x128xf32>
    %22 = vector.shape_cast %21 : vector<1x1x128xf32> to vector<1x128xf32>
    %23 = vector.broadcast %22 : vector<1x128xf32> to vector<8x128xf32>
    %24 = arith.addf %20, %23 : vector<8x128xf32>
    %25 = arith.addf %24, %17 : vector<8x128xf32>
    %26 = math.tanh %25 : vector<8x128xf32>
    %c3 = arith.constant 3 : index
    %c0_19 = arith.constant 0 : index
    %c0_20 = arith.constant 0 : index
    %27 = vector.load %arg2[%c3, %c0_19, %c0_20] : memref<4x128x128xf32, #tpu.memory_space<vmem>>, vector<1x128x128xf32>
    %28 = vector.shape_cast %27 : vector<1x128x128xf32> to vector<128x128xf32>
    %cst_21 = arith.constant dense<0.000000e+00> : vector<8x128xf32>
    %29 = tpu.matmul %26, %28, %cst_21 {dimension_numbers = #tpu.dot_dimension_numbers<[1], [0], [0], [1], [0, 0, 1, 1], [], []>} : vector<8x128xf32>, vector<128x128xf32>, vector<8x128xf32> -> vector<8x128xf32>
    %c3_22 = arith.constant 3 : index
    %c0_23 = arith.constant 0 : index
    %c0_24 = arith.constant 0 : index
    %30 = vector.load %arg3[%c3_22, %c0_23, %c0_24] : memref<4x1x128xf32, #tpu.memory_space<vmem>>, vector<1x1x128xf32>
    %31 = vector.shape_cast %30 : vector<1x1x128xf32> to vector<1x128xf32>
    %32 = vector.broadcast %31 : vector<1x128xf32> to vector<8x128xf32>
    %33 = arith.addf %29, %32 : vector<8x128xf32>
    %c0_25 = arith.constant 0 : index
    %c0_26 = arith.constant 0 : index
    %34 = vector.load %arg4[%c0_25, %c0_26] : memref<8x128xf32, #tpu.memory_space<vmem>>, vector<8x128xf32>
    tpu.vector_store %arg4[%c0_25, %c0_26], %33 {strides = array<i32>} : memref<8x128xf32, #tpu.memory_space<vmem>>, vector<8x128xf32>,
    return
  }
  func.func @transform_0(%arg0: i32) -> (i32, i32) {
    %c0_i32 = arith.constant 0 : i32
    %c0_i32_0 = arith.constant 0 : i32
    return %arg0, %c0_i32 : i32, i32
  }
  func.func @transform_1(%arg0: i32) -> (i32, i32, i32) {
    %c0_i32 = arith.constant 0 : i32
    %c0_i32_0 = arith.constant 0 : i32
    %c0_i32_1 = arith.constant 0 : i32
    %c0_i32_2 = arith.constant 0 : i32
    return %c0_i32, %c0_i32_0, %c0_i32_1 : i32, i32, i32
  }
  func.func @transform_2(%arg0: i32) -> (i32, i32, i32) {
    %c0_i32 = arith.constant 0 : i32
    %c0_i32_0 = arith.constant 0 : i32
    %c0_i32_1 = arith.constant 0 : i32
    %c0_i32_2 = arith.constant 0 : i32
    return %c0_i32, %c0_i32_0, %c0_i32_1 : i32, i32, i32
  }
  func.func @transform_3(%arg0: i32) -> (i32, i32) {
    %c0_i32 = arith.constant 0 : i32
    %c0_i32_0 = arith.constant 0 : i32
    return %arg0, %c0_i32 : i32, i32
  }
}

</mosaic_0001>

<bundles_post_ra>
// kernel: tpu_custom_call.1
= control target key start
LH: loop header
LB: loop body
LE: loop exit
PB: predicated region body
PF: predicated region fallthrough
CT: control target
= control target key end

     0   :  { %8 = vsyncpa [#allocation3], 0  ;;  %s962_s0 = inlined_call_operand.hbm [shape: f32[8,128], index: 0, kind: input, shape index: {}]   ;;  %s963_s1 = inlined_call_operand.hbm [shape: f32[4,128,128], index: 1, kind: input, shape index: {}]   ;;  %s964_s2 = inlined_call_operand.vmem [shape: f32[4,1,128], index: 2, kind: input, shape index: {}]   ;;  %s965_s3 = inlined_call_operand.hbm [shape: f32[8,128], index: 3, kind: output, shape index: {}]  }
   0x1   :  { %9 = vsyncpa [#allocation6], 0 }
   0x2   :  { %10 = vsyncpa [#allocation4], 0  ;;  %s839_s12 = smov [#allocation2]   ;;  %s840_s14 = smov [#allocation5]  }
   0x3   :  { %s17_s13 = sshll.u32 %s839_s12, 4  ;;  %s26_s15 = sshll.u32 %s840_s14, 4  ;;  %s18_s13 = int_to_ptr.vmem [resolvable:$true] %s17_s13  ;;  %s867_s15 = int_to_ptr.vmem [resolvable:$true] %s26_s15 }
   0x4   :  { %s767_s18 = scalar_lea.hbm %s962_s0, 128 }
   0x5   :  { %p768_p0 = scmp.ne.s32.totalorder %s962_s0, %s767_s18  ;;  %p771_p1 = scmp.lt.u32.totalorder %s767_s18, %s962_s0 }
   0x7   :  { %p773_p2 = pnand %p771_p1, %p768_p0 }
   0x9   :  { %776 = shalt.err (!%p773_p2)
}
   0xa   :  { %s777_s23 = scalar_lea.vmem %s18_s13, 128  ;;  %p782_p4 = scmp.lt.s32.totalorder %s18_s13, %s18_s13 }
   0xb   :  { %p778_p3 = scmp.ne.s32.totalorder %s18_s13, %s777_s23  ;;  %p783_p5 = scmp.lt.s32.totalorder %s777_s23, %s777_s23 }
   0xd   :  { %p784_p6 = por %p783_p5, %p782_p4 }
   0xf   :  { %p785_p7 = pnand %p784_p6, %p778_p3 }
  0x11   :  { %788 = shalt.err (!%p785_p7)
}
  0x12   :  { %20 = dma.hbm_to_vmem [thread:$0]  %s962_s0, 128, %s18_s13, [#allocation3]  }
  0x13   :  { %s789_s28 = scalar_lea.hbm %s963_s1, 8192 }
  0x14   :  { %p790_p8 = scmp.ne.s32.totalorder %s963_s1, %s789_s28  ;;  %p793_p9 = scmp.lt.u32.totalorder %s789_s28, %s963_s1 }
  0x16   :  { %p795_p10 = pnand %p793_p9, %p790_p8 }
  0x18   :  { %798 = shalt.err (!%p795_p10)
}
  0x19   :  { %s799_s6 = scalar_lea.vmem %s867_s15, 8192  ;;  %p804_p12 = scmp.lt.s32.totalorder %s867_s15, %s867_s15 }
  0x1a   :  { %p800_p11 = scmp.ne.s32.totalorder %s867_s15, %s799_s6  ;;  %p805_p13 = scmp.lt.s32.totalorder %s799_s6, %s799_s6 }
  0x1c   :  { %p806_p0 = por %p805_p13, %p804_p12 }
  0x1e   :  { %p807_p1 = pnand %p806_p0, %p800_p11 }
  0x20   :  { %810 = shalt.err (!%p807_p1)
}
  0x21   :  { %s841_s0 = smov 128   ;;  %s842_s7 = smov 8  }
  0x22   :  { %32 = dma.hbm_to_vmem [thread:$0]  %s963_s1, 8192, %s867_s15, [#allocation6], %s841_s0, %s841_s0, %s842_s7  }
  0x23   :  { %833 = dma.done.wait [#allocation3], 128  }
  0x24   :  { %834 = vsyncadd [#allocation3], 4294967168 }
  0x25   :  { %835 = dma.done.wait [#allocation6], 8192  }
  0x26   :  { %836 = vsyncadd [#allocation6], 4294959104  ;;  %v843_v0 = vmov 0.0|0.0   ;;  %vm844_vm0 = vmmov 0   ;;  %v845_v1 = vmov 0.0   ;;  %v42_v2 = vld [vmem:[#allocation5] sm:$0xff] }
  0x27   :  { %657 = vmatprep.subr.bf16.mxu0 %v843_v0  ;;  %549 = vmatprep.mubr.msk.f32.mxu0 %vm844_vm0, %v845_v1  ;;  %v43_v3 = vld [vmem:[#allocation5 + $0x8] sm:$0xff]  ;;  %v44_v4 = vld [vmem:[#allocation5 + $0x10] sm:$0xff]  ;;  %v45_v6 = vld [vmem:[#allocation5 + $0x18] sm:$0xff]  ;;  %s846_s17 = smov [#allocation7]  }
  0x28   :  { %681 = vmatprep.subr.bf16.mxu1 %v843_v0  ;;  %584 = vmatprep.mubr.msk.f32.mxu1 %vm844_vm0, %v845_v1  ;;  %v658_v5 = vpack.c.bf16 %v43_v3, %v42_v2  ;;  %v661_v7 = vpack.c.bf16 %v45_v6, %v44_v4  ;;  %v46_v8 = vld [vmem:[#allocation5 + $0x20] sm:$0xff]  ;;  %v47_v9 = vld [vmem:[#allocation5 + $0x28] sm:$0xff]  ;;  %v139_v12 = vld [vmem:[#allocation5 + $0x90] sm:$0xff]  ;;  %s432_s18 = sshll.u32 %s846_s17, 4  ;;  %s433_s18 = int_to_ptr.vmem [resolvable:$true] %s432_s18 }
  0x29   :  { %v137_v10 = vld [vmem:[#allocation5 + $0x80] sm:$0xff]  ;;  %v138_v11 = vld [vmem:[#allocation5 + $0x88] sm:$0xff]  ;;  %v140_v13 = vld [vmem:[#allocation5 + $0x98] sm:$0xff]  ;;  %v664_v14 = vpack.c.bf16 %v47_v9, %v46_v8  ;;  %s811_s19 = scalar_lea.vmem %s433_s18, 128  ;;  %p816_p3 = scmp.lt.s32.totalorder %s433_s18, %s433_s18 }
  0x2a   :  { %659 = vmatpush3.bf16.msra.mxu0 %v658_v5  ;;  %v682_v15 = vpack.c.bf16 %v138_v11, %v137_v10  ;;  %v48_v16 = vld [vmem:[#allocation5 + $0x30] sm:$0xff]  ;;  %v49_v17 = vld [vmem:[#allocation5 + $0x38] sm:$0xff]  ;;  %v685_v18 = vpack.c.bf16 %v140_v13, %v139_v12  ;;  %v141_v19 = vld [vmem:[#allocation5 + $0xa0] sm:$0xff]  ;;  %p812_p2 = scmp.ne.s32.totalorder %s433_s18, %s811_s19  ;;  %p817_p4 = scmp.lt.s32.totalorder %s811_s19, %s811_s19 }
  0x2b   :  { %660 = vmatprep.subr.bf16.mxu0 %v843_v0  ;;  %v142_v20 = vld [vmem:[#allocation5 + $0xa8] sm:$0xff]  ;;  %v667_v21 = vpack.c.bf16 %v49_v17, %v48_v16  ;;  %v50_v22 = vld [vmem:[#allocation5 + $0x40] sm:$0xff]  ;;  %v143_v25 = vld [vmem:[#allocation5 + $0xb0] sm:$0xff] }
  0x2c   :  { %683 = vmatpush3.bf16.msra.mxu1 %v682_v15  ;;  %v51_v23 = vld [vmem:[#allocation5 + $0x48] sm:$0xff]  ;;  %v688_v24 = vpack.c.bf16 %v142_v20, %v141_v19  ;;  %v144_v26 = vld [vmem:[#allocation5 + $0xb8] sm:$0xff]  ;;  %v52_v28 = vld [vmem:[#allocation5 + $0x50] sm:$0xff]  ;;  %p818_p5 = por %p817_p4, %p816_p3 }
  0x2d   :  { %684 = vmatprep.subr.bf16.mxu1 %v843_v0  ;;  %v670_v27 = vpack.c.bf16 %v51_v23, %v50_v22  ;;  %v53_v29 = vld [vmem:[#allocation5 + $0x58] sm:$0xff]  ;;  %v691_v30 = vpack.c.bf16 %v144_v26, %v143_v25  ;;  %v145_v31 = vld [vmem:[#allocation5 + $0xc0] sm:$0xff]  ;;  %v146_v32 = vld [vmem:[#allocation5 + $0xc8] sm:$0xff] }
  0x2e   :  { %662 = vmatpush3.bf16.msra.mxu0 %v661_v7  ;;  %v673_v33 = vpack.c.bf16 %v53_v29, %v52_v28  ;;  %v54_v34 = vld [vmem:[#allocation5 + $0x60] sm:$0xff]  ;;  %v55_v35 = vld [vmem:[#allocation5 + $0x68] sm:$0xff]  ;;  %v694_v36 = vpack.c.bf16 %v146_v32, %v145_v31  ;;  %v56_v38 = vld [vmem:[#allocation5 + $0x70] sm:$0xff]  ;;  %p819_p6 = pnand %p818_p5, %p812_p2 }
  0x2f   :  { %663 = vmatprep.subr.bf16.mxu0 %v843_v0  ;;  %v676_v37 = vpack.c.bf16 %v55_v35, %v54_v34  ;;  %v57_v39 = vld [vmem:[#allocation5 + $0x78] sm:$0xff]  ;;  %v147_v42 = vld [vmem:[#allocation5 + $0xd0] sm:$0xff]  ;;  %v149_v45 = vld [vmem:[#allocation5 + $0xe0] sm:$0xff] }
  0x30   :  { %686 = vmatpush3.bf16.msra.mxu1 %v685_v18  ;;  %v679_v40 = vpack.c.bf16 %v57_v39, %v56_v38  ;;  %v41_v41 = vld [vmem:[#allocation2] sm:$0xff]  ;;  %v150_v46 = vld [vmem:[#allocation5 + $0xe8] sm:$0xff]  ;;  %v151_v48 = vld [vmem:[#allocation5 + $0xf0] sm:$0xff] }
  0x31   :  { %687 = vmatprep.subr.bf16.mxu1 %v843_v0  ;;  %v148_v43 = vld [vmem:[#allocation5 + $0xd8] sm:$0xff]  ;;  %v700_v47 = vpack.c.bf16 %v150_v46, %v149_v45  ;;  %v234_v51 = vld [vmem:[#allocation5 + $0x100] sm:$0xff]  ;;  %v235_v52 = vld [vmem:[#allocation5 + $0x108] sm:$0xff] }
  0x32   :  { %665 = vmatpush3.bf16.msra.mxu0 %v664_v14  ;;  %v697_v44 = vpack.c.bf16 %v148_v43, %v147_v42  ;;  %v152_v49 = vld [vmem:[#allocation5 + $0xf8] sm:$0xff]  ;;  %v236_v53 = vld [vmem:[#allocation5 + $0x110] sm:$0xff]  ;;  %v706_v54 = vpack.c.bf16 %v235_v52, %v234_v51  ;;  %v238_v57 = vld [vmem:[#allocation5 + $0x120] sm:$0xff] }
  0x33   :  { %666 = vmatprep.subr.bf16.mxu0 %v843_v0  ;;  %v703_v50 = vpack.c.bf16 %v152_v49, %v151_v48  ;;  %v237_v55 = vld [vmem:[#allocation5 + $0x118] sm:$0xff]  ;;  %v239_v58 = vld [vmem:[#allocation5 + $0x128] sm:$0xff]  ;;  %v240_v60 = vld [vmem:[#allocation5 + $0x130] sm:$0xff] }
  0x34   :  { %689 = vmatpush3.bf16.msra.mxu1 %v688_v24  ;;  %v709_v56 = vpack.c.bf16 %v237_v55, %v236_v53  ;;  %v712_v59 = vpack.c.bf16 %v239_v58, %v238_v57  ;;  %v241_v61 = vld [vmem:[#allocation5 + $0x138] sm:$0xff]  ;;  %v242_v6 = vld [vmem:[#allocation5 + $0x140] sm:$0xff]  ;;  %v243_v7 = vld [vmem:[#allocation5 + $0x148] sm:$0xff] }
  0x35   :  { %690 = vmatprep.subr.bf16.mxu1 %v843_v0  ;;  %v715_v62 = vpack.c.bf16 %v241_v61, %v240_v60  ;;  %v442_v63 = vld [vmem:[%s964_s2] ss:$0 sm:$0xff]  ;;  %v718_v8 = vpack.c.bf16 %v243_v7, %v242_v6  ;;  %v244_v9 = vld [vmem:[#allocation5 + $0x150] sm:$0xff]  ;;  %v246_v12 = vld [vmem:[#allocation5 + $0x160] sm:$0xff] }
  0x36   :  { %668 = vmatpush3.bf16.msra.mxu0 %v667_v21  ;;  %v245_v10 = vld [vmem:[#allocation5 + $0x158] sm:$0xff]  ;;  %v247_v13 = vld [vmem:[#allocation5 + $0x168] sm:$0xff]  ;;  %v248_v15 = vld [vmem:[#allocation5 + $0x170] sm:$0xff] }
  0x37   :  { %669 = vmatprep.subr.bf16.mxu0 %v843_v0  ;;  %v721_v11 = vpack.c.bf16 %v245_v10, %v244_v9  ;;  %v724_v14 = vpack.c.bf16 %v247_v13, %v246_v12  ;;  %v249_v16 = vld [vmem:[#allocation5 + $0x178] sm:$0xff]  ;;  %v332_v18 = vld [vmem:[#allocation5 + $0x188] sm:$0xff]  ;;  %v333_v19 = vld [vmem:[#allocation5 + $0x190] sm:$0xff] }
  0x38   :  { %692 = vmatpush3.bf16.msra.mxu1 %v691_v30  ;;  %v727_v17 = vpack.c.bf16 %v249_v16, %v248_v15  ;;  %v334_v21 = vld [vmem:[#allocation5 + $0x198] sm:$0xff]  ;;  %v335_v23 = vld [vmem:[#allocation5 + $0x1a0] sm:$0xff]  ;;  %v336_v24 = vld [vmem:[#allocation5 + $0x1a8] sm:$0xff] }
  0x39   :  { %693 = vmatprep.subr.bf16.mxu1 %v843_v0  ;;  %v733_v22 = vpack.c.bf16 %v334_v21, %v333_v19  ;;  %v736_v25 = vpack.c.bf16 %v336_v24, %v335_v23  ;;  %v337_v26 = vld [vmem:[#allocation5 + $0x1b0] sm:$0xff]  ;;  %v444_v29 = vld [vmem:[%s964_s2 + $0x1] ss:$0 sm:$0xff]  ;;  %v339_v35 = vld [vmem:[#allocation5 + $0x1c0] sm:$0xff] }
  0x3a   :  { %671 = vmatpush3.bf16.msra.mxu0 %v670_v27  ;;  %v338_v27 = vld [vmem:[#allocation5 + $0x1b8] sm:$0xff]  ;;  %v341_v38 = vld [vmem:[#allocation5 + $0x1d0] sm:$0xff]  ;;  %v344_v42 = vld [vmem:[#allocation5 + $0x1e8] sm:$0xff] }
  0x3b   :  { %672 = vmatprep.subr.bf16.mxu0 %v843_v0  ;;  %v739_v28 = vpack.c.bf16 %v338_v27, %v337_v26  ;;  %v342_v39 = vld [vmem:[#allocation5 + $0x1d8] sm:$0xff] }
  0x3c   :  { %695 = vmatpush3.bf16.msra.mxu1 %v694_v36  ;;  %v340_v36 = vld [vmem:[#allocation5 + $0x1c8] sm:$0xff]  ;;  %v346_v45 = vld [vmem:[#allocation5 + $0x1f8] sm:$0xff] }
  0x3d   :  { %696 = vmatprep.subr.bf16.mxu1 %v843_v0  ;;  %v448_v53 = vld [vmem:[%s964_s2 + $0x3] ss:$0 sm:$0xff] }
  0x3e   :  { %674 = vmatpush3.bf16.msra.mxu0 %v673_v33 }
  0x3f   :  { %675 = vmatprep.subr.bf16.mxu0 %v843_v0 }
  0x40   :  { %698 = vmatpush3.bf16.msra.mxu1 %v697_v44  ;;  %v345_v44 = vld [vmem:[#allocation5 + $0x1f0] sm:$0xff] }
  0x41   :  { %699 = vmatprep.subr.bf16.mxu1 %v843_v0  ;;  %v751_v46 = vpack.c.bf16 %v346_v45, %v345_v44 }
  0x42   :  { %677 = vmatpush3.bf16.msra.mxu0 %v676_v37  ;;  %v742_v37 = vpack.c.bf16 %v340_v36, %v339_v35 }
  0x43   :  { %678 = vmatprep.subr.bf16.mxu0 %v843_v0 }
  0x44   :  { %701 = vmatpush3.bf16.msra.mxu1 %v700_v47  ;;  %v446_v47 = vld [vmem:[%s964_s2 + $0x2] ss:$0 sm:$0xff] }
  0x45   :  { %702 = vmatprep.subr.bf16.mxu1 %v843_v0 }
  0x46   :  { %680 = vmatpush3.bf16.msra.mxu0 %v679_v40  ;;  %v745_v40 = vpack.c.bf16 %v342_v39, %v341_v38 }
  0x47   :  { %705 = vmatprep.subr.bf16.mxu0 %v843_v0 }
  0x48   :  { %704 = vmatpush3.bf16.msra.mxu1 %v703_v50 }
  0x49   :  { %550 = vmatmul.mubr.f32.vlgmr.msra.gmra.mrb[0].mxu0 %v41_v41  ;;  %729 = vmatprep.subr.bf16.mxu1 %v843_v0  ;;  %v343_v41 = vld [vmem:[#allocation5 + $0x1e0] sm:$0xff] }
  0x4a   :  { %619 = vmatprep.mubr.msk.f32.mxu0 %vm844_vm0, %v845_v1  ;;  %707 = vmatpush3.bf16.msra.mxu0 %v706_v54  ;;  %v748_v43 = vpack.c.bf16 %v344_v42, %v343_v41 }
  0x4b   :  { %708 = vmatprep.subr.bf16.mxu0 %v843_v0 }
  0x4e   :  { %710 = vmatpush3.bf16.msra.mxu0 %v709_v56 }
  0x4f   :  { %711 = vmatprep.subr.bf16.mxu0 %v843_v0 }
  0x52   :  { %713 = vmatpush3.bf16.msra.mxu0 %v712_v59 }
  0x53   :  { %714 = vmatprep.subr.bf16.mxu0 %v843_v0 }
  0x56   :  { %716 = vmatpush3.bf16.msra.mxu0 %v715_v62 }
  0x57   :  { %717 = vmatprep.subr.bf16.mxu0 %v843_v0 }
  0x5a   :  { %719 = vmatpush3.bf16.msra.mxu0 %v718_v8 }
  0x5b   :  { %720 = vmatprep.subr.bf16.mxu0 %v843_v0 }
  0x5e   :  { %722 = vmatpush3.bf16.msra.mxu0 %v721_v11 }
  0x5f   :  { %723 = vmatprep.subr.bf16.mxu0 %v843_v0 }
  0x62   :  { %725 = vmatpush3.bf16.msra.mxu0 %v724_v14 }
  0x63   :  { %726 = vmatprep.subr.bf16.mxu0 %v843_v0 }
  0x66   :  { %728 = vmatpush3.bf16.msra.mxu0 %v727_v17 }
 0x11c   :  { %v131_v2 = vpop.f32.mrb[0].mxu0 }
 0x11d   :  { %v132_v3 = vadd.f32 %v442_v63, %v131_v2  ;;  %v551_v4 = vpop.f32.mrb[1].mxu0 }
 0x11f   :  { %761 = vtanh.f32 %v132_v3 }
 0x129   :  { %v762_v5 = vpop.eup %761 }
 0x12a   :  { %585 = vmatmul.mubr.f32.vlgmr.msra.gmra.mrb[0].mxu1 %v762_v5 }
 0x12b   :  { %654 = vmatprep.mubr.msk.f32.mxu1 %vm844_vm0, %v845_v1  ;;  %v331_v1 = vld [vmem:[#allocation5 + $0x180] sm:$0xff] }
 0x12c   :  { %v730_v20 = vpack.c.bf16 %v332_v18, %v331_v1 }
 0x12e   :  { %731 = vmatpush3.bf16.msra.mxu1 %v730_v20 }
 0x12f   :  { %732 = vmatprep.subr.bf16.mxu1 %v843_v0 }
 0x132   :  { %734 = vmatpush3.bf16.msra.mxu1 %v733_v22 }
 0x133   :  { %735 = vmatprep.subr.bf16.mxu1 %v843_v0 }
 0x136   :  { %737 = vmatpush3.bf16.msra.mxu1 %v736_v25 }
 0x137   :  { %738 = vmatprep.subr.bf16.mxu1 %v843_v0 }
 0x13a   :  { %740 = vmatpush3.bf16.msra.mxu1 %v739_v28 }
 0x13b   :  { %741 = vmatprep.subr.bf16.mxu1 %v843_v0 }
 0x13e   :  { %743 = vmatpush3.bf16.msra.mxu1 %v742_v37 }
 0x13f   :  { %744 = vmatprep.subr.bf16.mxu1 %v843_v0 }
 0x142   :  { %746 = vmatpush3.bf16.msra.mxu1 %v745_v40 }
 0x143   :  { %747 = vmatprep.subr.bf16.mxu1 %v843_v0 }
 0x146   :  { %749 = vmatpush3.bf16.msra.mxu1 %v748_v43 }
 0x147   :  { %750 = vmatprep.subr.bf16.mxu1 %v843_v0 }
 0x14a   :  { %752 = vmatpush3.bf16.msra.mxu1 %v751_v46 }
 0x1fd   :  { %v227_v30 = vpop.f32.mrb[0].mxu1 }
 0x1fe   :  { %v228_v31 = vadd.f32 %v444_v29, %v227_v30  ;;  %v586_v32 = vpop.f32.mrb[1].mxu1 }
 0x200   :  { %v231_v33 = vadd.f32 %v762_v5, %v228_v31 }
 0x202   :  { %763 = vtanh.f32 %v231_v33 }
 0x20c   :  { %v764_v34 = vpop.eup %763 }
 0x20d   :  { %620 = vmatmul.mubr.f32.vlgmr.msra.gmra.mrb[2].mxu0 %v764_v34 }
 0x2e0   :  { %v324_v48 = vpop.f32.mrb[2].mxu0 }
 0x2e1   :  { %v325_v49 = vadd.f32 %v446_v47, %v324_v48  ;;  %v621_v50 = vpop.f32.mrb[3].mxu0 }
 0x2e3   :  { %v328_v51 = vadd.f32 %v764_v34, %v325_v49 }
 0x2e5   :  { %765 = vtanh.f32 %v328_v51 }
 0x2ef   :  { %v766_v52 = vpop.eup %765 }
 0x2f0   :  { %655 = vmatmul.mubr.f32.vlgmr.msra.gmra.mrb[2].mxu1 %v766_v52 }
 0x3c3   :  { %v421_v54 = vpop.f32.mrb[2].mxu1 }
 0x3c4   :  { %v422_v0 = vadd.f32 %v448_v53, %v421_v54  ;;  %v656_v55 = vpop.f32.mrb[3].mxu1 }
 0x3c6   :  { %425 = vst [vmem:[#allocation7] sm:$0xff] %v422_v0 }
 0x3c7   :  { %822 = shalt.err (!%p819_p6)
}
 0x3c8   :  { %s823_s22 = scalar_lea.hbm %s965_s3, 128 }
 0x3c9   :  { %p824_p7 = scmp.ne.s32.totalorder %s965_s3, %s823_s22  ;;  %p827_p8 = scmp.lt.u32.totalorder %s823_s22, %s965_s3 }
 0x3cb   :  { %p829_p9 = pnand %p827_p8, %p824_p7 }
 0x3cd   :  { %832 = shalt.err (!%p829_p9)
}
 0x3ce   :  { %435 = dma.vmem_to_hbm [thread:$0]  %s433_s18, 128, %s965_s3, [#allocation4]  }
 0x3cf   :  { %837 = dma.done.wait [#allocation4], 128  }
 0x3d0   :  { %838 = vsyncadd [#allocation4], 4294967168 }
 0x3d1   :  { %439 = vsyncpa [#allocation3], 1 }
 0x3d2   :  { %440 = vsyncpa [#allocation6], 1 }
 0x3d3   :  { %441 = vsyncpa [#allocation4], 1 }

</bundles_post_ra>
